<compile_context>
chip_gen: v7x
topology: tpu7x:2x2x1
jax: 0.10.0
libtpu: 0.0.40
codegen_flags: <defaults>
</compile_context>

<pallas_src>
import functools

import jax
import jax.numpy as jnp
from jax.experimental import pallas as pl
from jax.experimental.pallas import tpu as pltpu

EPS = 1e-5  # nn.BatchNorm3d default eps


def _round_up(a, b):
    return (a + b - 1) // b * b


# ---------------------------------------------------------------------------
# Conv-once structure (Kpad >= 4*Cpad): pass 1 = fused GEMM + stats + store,
# pass 2 = epilogue only.
# ---------------------------------------------------------------------------
def _conv_stats_kernel(patches_ref, wcat_ref, cc_ref, stats_ref):
    cpad = stats_ref.shape[-1]
    cc = jnp.dot(patches_ref[...], wcat_ref[...],
                 preferred_element_type=jnp.float32)          # [tile_m, 2*Cpad]
    cc_ref[...] = cc.astype(cc_ref.dtype)
    conv = cc[:, :cpad]
    s1 = jnp.sum(conv, axis=0, keepdims=True)                 # [1, Cpad]
    s2 = jnp.sum(conv * conv, axis=0, keepdims=True)          # [1, Cpad]
    stats_ref[...] = jnp.concatenate([s1, s2], axis=0)[None]  # [1, 2, Cpad]


def _epilogue_kernel(cc_ref, scale_ref, bias_ref, out_ref):
    cpad = scale_ref.shape[-1]
    cc = cc_ref[...].astype(jnp.float32)
    y = jnp.maximum(cc[:, :cpad] * scale_ref[...] + bias_ref[...], 0.0) + cc[:, cpad:]
    out_ref[...] = y.astype(out_ref.dtype)


# ---------------------------------------------------------------------------
# Two-GEMM structure (tiny-Cin regime): pass 1 = stats GEMM, pass 2 = fused
# GEMM + epilogue (patches read twice, no conv intermediate in HBM).
# ---------------------------------------------------------------------------
def _stats_kernel(patches_ref, wcat_ref, stats_ref):
    cpad = stats_ref.shape[-1]
    conv = jnp.dot(patches_ref[...], wcat_ref[:, :cpad],
                   preferred_element_type=jnp.float32)        # [tile_m, Cpad]
    s1 = jnp.sum(conv, axis=0, keepdims=True)
    s2 = jnp.sum(conv * conv, axis=0, keepdims=True)
    stats_ref[...] = jnp.concatenate([s1, s2], axis=0)[None]


def _fused_main_kernel(patches_ref, wcat_ref, scale_ref, bias_ref, out_ref):
    cpad = scale_ref.shape[-1]
    cc = jnp.dot(patches_ref[...], wcat_ref[...],
                 preferred_element_type=jnp.float32)          # [tile_m, 2*Cpad]
    y = jnp.maximum(cc[:, :cpad] * scale_ref[...] + bias_ref[...], 0.0) + cc[:, cpad:]
    out_ref[...] = y.astype(out_ref.dtype)


# ---------------------------------------------------------------------------
# Wrapper-side layout glue.
# ---------------------------------------------------------------------------
def _im2col_3d(x_ndhwc, stride):
    """3x3x3 padded patches: returns ([M, 27*C], (Do, Ho, Wo)), tap-major rows."""
    N, D, H, W, C = x_ndhwc.shape
    sd, sh, sw = stride
    Do = (D + 2 - 3) // sd + 1
    Ho = (H + 2 - 3) // sh + 1
    Wo = (W + 2 - 3) // sw + 1
    xp = jnp.pad(x_ndhwc, ((0, 0), (1, 1), (1, 1), (1, 1), (0, 0)))
    parts = []
    for kd in range(3):
        for kh in range(3):
            for kw in range(3):
                parts.append(
                    xp[:,
                       kd:kd + (Do - 1) * sd + 1:sd,
                       kh:kh + (Ho - 1) * sh + 1:sh,
                       kw:kw + (Wo - 1) * sw + 1:sw,
                       :])
    p = jnp.stack(parts, axis=4)                      # [N,Do,Ho,Wo,27,C]
    return p.reshape(N * Do * Ho * Wo, 27 * C), (Do, Ho, Wo)


def _auto_tile_m(M, Kpad, Cpad2, in_bytes, budget_bytes=40 << 20, max_tile=2048):
    """Largest tile_m (mult of 8) fitting a ~40 MiB pipeline budget (v7x-safe),
    preferring grid_m >= 2 so both v7x TensorCores get work."""
    def footprint(tm):
        return (2 * tm * Kpad * in_bytes          # patches stream, double-buffered
                + 2 * tm * Cpad2 * 4              # widest output stream (f32 worst case)
                + 2 * Kpad * Cpad2 * in_bytes     # grid-invariant fused weights
                + (1 << 20))
    tm = min(max_tile, max(8, _round_up(-(-M // 2), 8)))
    while tm > 8 and footprint(tm) > budget_bytes:
        tm = max(8, _round_up(tm // 2, 8))
    return tm


@functools.partial(jax.jit, static_argnames=("stride", "tile_m", "gemm_dtype",
                                             "out_dtype", "conv_once"))
def efficient_res_block_3d(x_ncdhw, conv_w, sc_w, gamma, beta, stride, *,
                           tile_m=None, gemm_dtype=jnp.bfloat16,
                           out_dtype=None, conv_once=None):
    """x_ncdhw: [N, Cin, D, H, W] (PyTorch layout). Returns [N, Cout, Do, Ho, Wo].

    gemm_dtype: MXU operand / conv-intermediate dtype (bf16 recommended; the
    BN/ReLU epilogue math is always f32).  out_dtype: stored output dtype
    (None => gemm_dtype; pass jnp.float32 for PyTorch-exact output dtype).
    tile_m: rows of the GEMM per grid step (None => auto, VMEM-budget sized).
    conv_once: force the conv-once / two-GEMM structure (None => auto on
    Kpad vs Cpad).  Assumes bias=False for both convs (module config).
    """
    if isinstance(stride, int):
        stride = (stride, stride, stride)
    out_dtype = gemm_dtype if out_dtype is None else out_dtype

    x = jnp.transpose(x_ncdhw, (0, 2, 3, 4, 1)).astype(jnp.float32)   # NDHWC
    N, D, H, W, Cin = x.shape
    Cout = conv_w.shape[0]

    patches, (Do, Ho, Wo) = _im2col_3d(x, stride)                     # [M, 27*Cin]
    M = N * Do * Ho * Wo
    K = 27 * Cin
    Kpad = _round_up(K, 128)
    Cpad = _round_up(Cout, 128)
    Cpad2 = 2 * Cpad

    if conv_once is None:
        # Below this break-even, re-reading the patches stream is cheaper than
        # writing + re-reading the conv intermediate.
        conv_once = Kpad >= 4 * Cpad

    in_b = 2 if gemm_dtype in (jnp.bfloat16, jnp.float16) else 4
    if tile_m is None:
        tile_m = _auto_tile_m(M, Kpad, Cpad2, in_b)
    assert tile_m % 8 == 0, "tile_m must be a multiple of 8 sublanes"
    Mp = _round_up(M, tile_m)
    grid_m = Mp // tile_m

    footprint = (2 * tile_m * Kpad * in_b + 2 * tile_m * Cpad2 * 4
                 + 2 * Kpad * Cpad2 * in_b + (2 << 20))
    cparams = pltpu.CompilerParams(
        dimension_semantics=("parallel",),
        vmem_limit_bytes=int(min(96 << 20, max(32 << 20, footprint * 5 // 4))))
    # NOTE: grid-invariant operands (wcat/scale/bias) could be single-buffered
    # via pipeline_mode=pl.Buffered(1) to free VMEM under v7x's 64 MiB budget;
    # kept at defaults here for portability.

    # Zero-pad rows to a tile multiple and K to 128 lanes; cast GEMM operand.
    patches_p = jnp.pad(patches, ((0, Mp - M), (0, Kpad - K))).astype(gemm_dtype)

    # conv weight [Cout, Cin, 3,3,3] -> rows ordered (kd,kh,kw,Cin) to match im2col.
    w_mat = jnp.transpose(conv_w, (2, 3, 4, 1, 0)).reshape(K, Cout).astype(jnp.float32)
    center = 13 * Cin                       # tap (kd, kh, kw) = (1, 1, 1)
    if sc_w is None:
        assert Cin == Cout and all(s == 1 for s in stride), \
            "identity shortcut requires stride == 1 and in_channels == out_channels"
        sc_mat = jnp.eye(Cin, dtype=jnp.float32)
    else:
        sc_mat = jnp.transpose(sc_w.reshape(Cout, Cin), (1, 0)).astype(jnp.float32)
    # Fused [Kpad, 2*Cpad] weight: lanes [0,Cout) = 3x3x3 conv; lanes
    # [Cpad,Cpad+Cout) = 1x1x1 strided shortcut embedded at the center im2col
    # tap -> one 256-lane GEMM, no separate shortcut input stream.
    wcat = (jnp.zeros((Kpad, Cpad2), jnp.float32)
            .at[:K, :Cout].set(w_mat)
            .at[center:center + Cin, Cpad:Cpad + Cout].set(sc_mat)
            .astype(gemm_dtype))

    gamma_p = jnp.zeros((Cpad,), jnp.float32).at[:Cout].set(gamma.astype(jnp.float32))
    beta_p = jnp.zeros((Cpad,), jnp.float32).at[:Cout].set(beta.astype(jnp.float32))

    patches_spec = pl.BlockSpec((tile_m, Kpad), lambda i: (i, 0))
    wcat_spec = pl.BlockSpec((Kpad, Cpad2), lambda i: (0, 0))
    stats_spec = pl.BlockSpec((1, 2, Cpad), lambda i: (i, 0, 0))
    vec_spec = pl.BlockSpec((1, Cpad), lambda i: (0, 0))
    out_spec = pl.BlockSpec((tile_m, Cpad), lambda i: (i, 0))
    stats_shape = jax.ShapeDtypeStruct((grid_m, 2, Cpad), jnp.float32)

    # ---- pass 1 -------------------------------------------------------------
    if conv_once:
        cc, stats = pl.pallas_call(
            _conv_stats_kernel,
            out_shape=(jax.ShapeDtypeStruct((Mp, Cpad2), gemm_dtype), stats_shape),
            grid=(grid_m,),
            in_specs=[patches_spec, wcat_spec],
            out_specs=(pl.BlockSpec((tile_m, Cpad2), lambda i: (i, 0)), stats_spec),
            compiler_params=cparams,
        )(patches_p, wcat)
    else:
        stats = pl.pallas_call(
            _stats_kernel,
            out_shape=stats_shape,
            grid=(grid_m,),
            in_specs=[patches_spec, wcat_spec],
            out_specs=stats_spec,
            compiler_params=cparams,
        )(patches_p, wcat)

    # Training-mode (biased) BN stats; padded rows/channels contribute exactly 0.
    mean = jnp.sum(stats[:, 0, :], axis=0) / M
    var = jnp.maximum(jnp.sum(stats[:, 1, :], axis=0) / M - mean * mean, 0.0)
    inv = jax.lax.rsqrt(var + EPS)
    scale = (gamma_p * inv).reshape(1, Cpad)
    bias = (beta_p - mean * gamma_p * inv).reshape(1, Cpad)

    # ---- pass 2 -------------------------------------------------------------
    if conv_once:
        out_flat = pl.pallas_call(
            _epilogue_kernel,
            out_shape=jax.ShapeDtypeStruct((Mp, Cpad), out_dtype),
            grid=(grid_m,),
            in_specs=[pl.BlockSpec((tile_m, Cpad2), lambda i: (i, 0)),
                      vec_spec, vec_spec],
            out_specs=out_spec,
            compiler_params=cparams,
        )(cc, scale, bias)
    else:
        out_flat = pl.pallas_call(
            _fused_main_kernel,
            out_shape=jax.ShapeDtypeStruct((Mp, Cpad), out_dtype),
            grid=(grid_m,),
            in_specs=[patches_spec, wcat_spec, vec_spec, vec_spec],
            out_specs=out_spec,
            compiler_params=cparams,
        )(patches_p, wcat, scale, bias)

    out = out_flat[:M, :Cout].reshape(N, Do, Ho, Wo, Cout)
    return jnp.transpose(out, (0, 4, 1, 2, 3))                        # NCDHW


def _reference(x_ncdhw, conv_w, sc_w, gamma, beta, stride):
    """Pure-JAX f32 reference mirroring the PyTorch forward (BN training mode)."""
    x = jnp.transpose(x_ncdhw, (0, 2, 3, 4, 1)).astype(jnp.float32)
    dn = ("NDHWC", "DHWIO", "NDHWC")
    w = jnp.transpose(conv_w, (2, 3, 4, 1, 0)).astype(jnp.float32)
    out = jax.lax.conv_general_dilated(x, w, window_strides=stride,
                                       padding=[(1, 1)] * 3, dimension_numbers=dn)
    mean = jnp.mean(out, axis=(0, 1, 2, 3), keepdims=True)
    var = jnp.mean((out - mean) ** 2, axis=(0, 1, 2, 3), keepdims=True)
    out = (out - mean) * jax.lax.rsqrt(var + EPS) * gamma + beta
    out = jnp.maximum(out, 0.0)
    if sc_w is None:
        sc = x[:, ::stride[0], ::stride[1], ::stride[2], :]
    else:
        wsc = jnp.transpose(sc_w, (2, 3, 4, 1, 0)).astype(jnp.float32)
        sc = jax.lax.conv_general_dilated(x, wsc, window_strides=stride,
                                          padding=[(0, 0)] * 3, dimension_numbers=dn)
    out = out + sc
    return jnp.transpose(out, (0, 4, 1, 2, 3))


if __name__ == "__main__":
    # Module config: in_channels=4, out_channels=8, stride=2, temporal_stride=2
    N, Cin, Cout = 2, 4, 8
    D, H, W = 8, 16, 16
    stride = (2, 2, 2)

    key = jax.random.PRNGKey(0)
    kx, kw, ks, kg, kb = jax.random.split(key, 5)
    x = jax.random.normal(kx, (N, Cin, D, H, W), dtype=jnp.float32)
    conv_w = jax.random.normal(kw, (Cout, Cin, 3, 3, 3), dtype=jnp.float32) * 0.1
    sc_w = jax.random.normal(ks, (Cout, Cin, 1, 1, 1), dtype=jnp.float32) * 0.1
    gamma = 1.0 + 0.1 * jax.random.normal(kg, (Cout,), dtype=jnp.float32)
    beta = 0.1 * jax.random.normal(kb, (Cout,), dtype=jnp.float32)

    ref = _reference(x, conv_w, sc_w, gamma, beta, stride)

    # f32 GEMM path, both structures, tight check against the f32 reference
    # (tile_m=128 => 4 grid steps, exercising the cross-tile BN reduction).
    for co in (False, True):
        out32 = efficient_res_block_3d(x, conv_w, sc_w, gamma, beta, stride,
                                       tile_m=128, gemm_dtype=jnp.float32,
                                       out_dtype=jnp.float32, conv_once=co)
        out32 = jax.block_until_ready(out32)
        assert out32.shape == ref.shape == (N, Cout, D // 2, H // 2, W // 2)
        assert jnp.allclose(out32, ref, atol=2e-4, rtol=2e-4), \
            f"f32 conv_once={co} max abs err {jnp.max(jnp.abs(out32 - ref))}"

    # Default bf16 path (auto structure + forced conv-once): bf16 tolerance.
    for co in (None, True):
        outbf = efficient_res_block_3d(x, conv_w, sc_w, gamma, beta, stride,
                                       conv_once=co)
        outbf = jax.block_until_ready(outbf).astype(jnp.float32)
        assert jnp.allclose(outbf, ref, atol=7e-2, rtol=7e-2), \
            f"bf16 conv_once={co} max abs err {jnp.max(jnp.abs(outbf - ref))}"

    # Identity-shortcut config (stride 1, Cin == Cout) via the embedded
    # center-tap identity in the fused weight.
    Ci = 8
    xi = jax.random.normal(kx, (1, Ci, 4, 8, 8), dtype=jnp.float32)
    wi = jax.random.normal(kw, (Ci, Ci, 3, 3, 3), dtype=jnp.float32) * 0.1
    gi = jnp.ones((Ci,), jnp.float32)
    bi = jnp.zeros((Ci,), jnp.float32)
    refi = _reference(xi, wi, None, gi, bi, (1, 1, 1))
    outi = efficient_res_block_3d(xi, wi, None, gi, bi, (1, 1, 1))
    outi = jax.block_until_ready(outi).astype(jnp.float32)
    assert jnp.allclose(outi, refi, atol=7e-2, rtol=7e-2), \
        f"identity max abs err {jnp.max(jnp.abs(outi - refi))}"

    print("KERNEL_OK")
</pallas_src>

<mosaic_0001>
module attributes {stable_mosaic.version = 11 : i64} {
  func.func @_stats_kernel(%arg0: i32, %arg1: memref<128x128xf32, #tpu.memory_space<vmem>>, %arg2: memref<128x256xf32, #tpu.memory_space<vmem>>, %arg3: memref<1x2x128xf32, #tpu.memory_space<vmem>>) attributes {dimension_semantics = [#tpu.dimension_semantics<parallel>], iteration_bounds = array<i64: 4>, scalar_prefetch = 0 : i64, scratch_operands = 0 : i64, tpu.core_type = #tpu.core_type<tc>, window_params = [{transform_indices = @transform_0, window_bounds = array<i64: 128, 128>}, {pipeline_mode = #tpu.pipeline_mode<synchronous>, transform_indices = @transform_1, window_bounds = array<i64: 128, 256>}, {transform_indices = @transform_2, window_bounds = array<i64: 1, 2, 128>}]} {
    %c0 = arith.constant 0 : index
    %c0_0 = arith.constant 0 : index
    %0 = vector.load %arg1[%c0, %c0_0] : memref<128x128xf32, #tpu.memory_space<vmem>>, vector<128x128xf32>
    %c0_1 = arith.constant 0 : index
    %c0_2 = arith.constant 0 : index
    %1 = vector.load %arg2[%c0_1, %c0_2] : memref<128x256xf32, #tpu.memory_space<vmem>>, vector<128x128xf32>
    %cst = arith.constant dense<0.000000e+00> : vector<128x128xf32>
    %2 = tpu.matmul %0, %1, %cst {dimension_numbers = #tpu.dot_dimension_numbers<[1], [0], [0], [1], [0, 0, 1, 1], [], []>} : vector<128x128xf32>, vector<128x128xf32>, vector<128x128xf32> -> vector<128x128xf32>
    %cst_3 = arith.constant dense<0.000000e+00> : vector<128xf32>
    %3 = vector.multi_reduction <add>, %2, %cst_3 [0] : vector<128x128xf32> to vector<128xf32>
    %4 = vector.shape_cast %3 : vector<128xf32> to vector<1x128xf32>
    %5 = arith.mulf %2, %2 : vector<128x128xf32>
    %cst_4 = arith.constant dense<0.000000e+00> : vector<128xf32>
    %6 = vector.multi_reduction <add>, %5, %cst_4 [0] : vector<128x128xf32> to vector<128xf32>
    %7 = vector.shape_cast %6 : vector<128xf32> to vector<1x128xf32>
    %8 = tpu.concatenate %4, %7 in 0 : vector<1x128xf32>, vector<1x128xf32> -> vector<2x128xf32>
    %9 = vector.shape_cast %8 : vector<2x128xf32> to vector<1x2x128xf32>
    %c0_5 = arith.constant 0 : index
    %c0_6 = arith.constant 0 : index
    %c0_7 = arith.constant 0 : index
    %10 = vector.load %arg3[%c0_5, %c0_6, %c0_7] : memref<1x2x128xf32, #tpu.memory_space<vmem>>, vector<1x2x128xf32>
    tpu.vector_store %arg3[%c0_5, %c0_6, %c0_7], %9 {strides = array<i32>} : memref<1x2x128xf32, #tpu.memory_space<vmem>>, vector<1x2x128xf32>,
    return
  }
  func.func @transform_0(%arg0: i32) -> (i32, i32) {
    %c0_i32 = arith.constant 0 : i32
    %c0_i32_0 = arith.constant 0 : i32
    return %arg0, %c0_i32 : i32, i32
  }
  func.func @transform_1(%arg0: i32) -> (i32, i32) {
    %c0_i32 = arith.constant 0 : i32
    %c0_i32_0 = arith.constant 0 : i32
    %c0_i32_1 = arith.constant 0 : i32
    return %c0_i32, %c0_i32_0 : i32, i32
  }
  func.func @transform_2(%arg0: i32) -> (i32, i32, i32) {
    %c0_i32 = arith.constant 0 : i32
    %c0_i32_0 = arith.constant 0 : i32
    %c0_i32_1 = arith.constant 0 : i32
    return %arg0, %c0_i32, %c0_i32_0 : i32, i32, i32
  }
}

module attributes {stable_mosaic.version = 11 : i64} {
  func.func @_fused_main_kernel(%arg0: i32, %arg1: memref<128x128xf32, #tpu.memory_space<vmem>>, %arg2: memref<128x256xf32, #tpu.memory_space<vmem>>, %arg3: memref<1x128xf32, #tpu.memory_space<vmem>>, %arg4: memref<1x128xf32, #tpu.memory_space<vmem>>, %arg5: memref<128x128xf32, #tpu.memory_space<vmem>>) attributes {dimension_semantics = [#tpu.dimension_semantics<parallel>], iteration_bounds = array<i64: 4>, scalar_prefetch = 0 : i64, scratch_operands = 0 : i64, tpu.core_type = #tpu.core_type<tc>, window_params = [{transform_indices = @transform_0, window_bounds = array<i64: 128, 128>}, {pipeline_mode = #tpu.pipeline_mode<synchronous>, transform_indices = @transform_1, window_bounds = array<i64: 128, 256>}, {pipeline_mode = #tpu.pipeline_mode<synchronous>, transform_indices = @transform_2, window_bounds = array<i64: 1, 128>}, {pipeline_mode = #tpu.pipeline_mode<synchronous>, transform_indices = @transform_3, window_bounds = array<i64: 1, 128>}, {transform_indices = @transform_4, window_bounds = array<i64: 128, 128>}]} {
    %c0 = arith.constant 0 : index
    %c0_0 = arith.constant 0 : index
    %0 = vector.load %arg1[%c0, %c0_0] : memref<128x128xf32, #tpu.memory_space<vmem>>, vector<128x128xf32>
    %c0_1 = arith.constant 0 : index
    %c0_2 = arith.constant 0 : index
    %1 = vector.load %arg2[%c0_1, %c0_2] : memref<128x256xf32, #tpu.memory_space<vmem>>, vector<128x256xf32>
    %cst = arith.constant dense<0.000000e+00> : vector<128x256xf32>
    %2 = tpu.matmul %0, %1, %cst {dimension_numbers = #tpu.dot_dimension_numbers<[1], [0], [0], [1], [0, 0, 1, 1], [], []>} : vector<128x128xf32>, vector<128x256xf32>, vector<128x256xf32> -> vector<128x256xf32>
    %3 = vector.extract_strided_slice %2 {offsets = [0, 0], sizes = [128, 128], strides = [1, 1]} : vector<128x256xf32> to vector<128x128xf32>
    %c0_3 = arith.constant 0 : index
    %c0_4 = arith.constant 0 : index
    %4 = vector.load %arg3[%c0_3, %c0_4] : memref<1x128xf32, #tpu.memory_space<vmem>>, vector<1x128xf32>
    %5 = vector.broadcast %4 : vector<1x128xf32> to vector<128x128xf32>
    %6 = arith.mulf %3, %5 : vector<128x128xf32>
    %c0_5 = arith.constant 0 : index
    %c0_6 = arith.constant 0 : index
    %7 = vector.load %arg4[%c0_5, %c0_6] : memref<1x128xf32, #tpu.memory_space<vmem>>, vector<1x128xf32>
    %8 = vector.broadcast %7 : vector<1x128xf32> to vector<128x128xf32>
    %9 = arith.addf %6, %8 : vector<128x128xf32>
    %cst_7 = arith.constant 0.000000e+00 : f32
    %10 = vector.broadcast %cst_7 : f32 to vector<128x128xf32>
    %11 = arith.maximumf %9, %10 : vector<128x128xf32>
    %12 = vector.extract_strided_slice %2 {offsets = [0, 128], sizes = [128, 128], strides = [1, 1]} : vector<128x256xf32> to vector<128x128xf32>
    %13 = arith.addf %11, %12 : vector<128x128xf32>
    %c0_8 = arith.constant 0 : index
    %c0_9 = arith.constant 0 : index
    %14 = vector.load %arg5[%c0_8, %c0_9] : memref<128x128xf32, #tpu.memory_space<vmem>>, vector<128x128xf32>
    tpu.vector_store %arg5[%c0_8, %c0_9], %13 {strides = array<i32>} : memref<128x128xf32, #tpu.memory_space<vmem>>, vector<128x128xf32>,
    return
  }
  func.func @transform_0(%arg0: i32) -> (i32, i32) {
    %c0_i32 = arith.constant 0 : i32
    %c0_i32_0 = arith.constant 0 : i32
    return %arg0, %c0_i32 : i32, i32
  }
  func.func @transform_1(%arg0: i32) -> (i32, i32) {
    %c0_i32 = arith.constant 0 : i32
    %c0_i32_0 = arith.constant 0 : i32
    %c0_i32_1 = arith.constant 0 : i32
    return %c0_i32, %c0_i32_0 : i32, i32
  }
  func.func @transform_2(%arg0: i32) -> (i32, i32) {
    %c0_i32 = arith.constant 0 : i32
    %c0_i32_0 = arith.constant 0 : i32
    %c0_i32_1 = arith.constant 0 : i32
    return %c0_i32, %c0_i32_0 : i32, i32
  }
  func.func @transform_3(%arg0: i32) -> (i32, i32) {
    %c0_i32 = arith.constant 0 : i32
    %c0_i32_0 = arith.constant 0 : i32
    %c0_i32_1 = arith.constant 0 : i32
    return %c0_i32, %c0_i32_0 : i32, i32
  }
  func.func @transform_4(%arg0: i32) -> (i32, i32) {
    %c0_i32 = arith.constant 0 : i32
    %c0_i32_0 = arith.constant 0 : i32
    return %arg0, %c0_i32 : i32, i32
  }
}

</mosaic_0001>

<bundles_post_ra>
// kernel: efficient_res_block_3d.2
= control target key start
LH: loop header
LB: loop body
LE: loop exit
PB: predicated region body
PF: predicated region fallthrough
CT: control target
= control target key end

     0   :  { %s612_s9 = smov 0   ;;  %s700_s0 = inlined_call_operand.vmem [shape: f32[512,128], index: 0, kind: input, shape index: {}]   ;;  %s701_s1 = inlined_call_operand.vmem [shape: f32[128,256], index: 1, kind: input, shape index: {}]   ;;  %s702_s2 = inlined_call_operand.vmem [shape: f32[4,2,128], index: 2, kind: output, shape index: {}]  }
   0x1 LB: > { %s618_s10 = sadd.s32 4294967295, %s595_s9   ;;  %p439_p0 = scmp.ge.s32.totalorder %s595_s9, 1  ;;  %s595_s9 = sphi %s612_s9, %s12_s9  }
   0x2   : > { %p113_p1 = scmp.lt.s32.totalorder %s595_s9, 5 }
   0x4   : > { %p114_p2 = pnand %p439_p0, %p113_p1 }
   0x5   : > { %v160_v0 = vld [vmem:[%s701_s1] sm:$0xff] (!%p114_p2)  ;;  %v161_v1 = vld [vmem:[%s701_s1 + $0x10] sm:$0xff] (!%p114_p2)  ;;  %s440_s17 = sshll.u32 (!%p114_p2), %s618_s10, 4  ;;  %p140_p4 = scmp.lt.s32.totalorder (!%p114_p2), %s618_s10, 3  ;;  %vm379_vm0 = vcmask (!%p114_p2), 1040384  }
   0x6   : > { %117 = sbr.rel (%p114_p2) target bundleno = 301 (0x12d), region = 28  ;;  %v162_v2 = vld [vmem:[%s701_s1 + $0x20] sm:$0xff] (!%p114_p2)  ;;  %v533_v3 = vpack.c.bf16 (!%p114_p2), %v161_v1, %v160_v0  ;;  %v163_v4 = vld [vmem:[%s701_s1 + $0x30] sm:$0xff] (!%p114_p2)  ;;  %p135_p3 = scmp.lt.s32.totalorder (!%p114_p2), %s440_s17, 63 }
   0x7   : > { %v537_v5 = vpack.c.bf16 (!%p114_p2), %v163_v4, %v162_v2  ;;  %v164_v6 = vld [vmem:[%s701_s1 + $0x40] sm:$0xff] (!%p114_p2)  ;;  %v165_v7 = vld [vmem:[%s701_s1 + $0x50] sm:$0xff] (!%p114_p2) }
   0x8   : > { %534 = vmatprep.subr.bf16.mxu0 (!%p114_p2), %v533_v3  ;;  %565 = vmatprep.subr.bf16.mxu1 (!%p114_p2), %v533_v3  ;;  %v541_v8 = vpack.c.bf16 (!%p114_p2), %v165_v7, %v164_v6  ;;  %v166_v9 = vld [vmem:[%s701_s1 + $0x60] sm:$0xff] (!%p114_p2)  ;;  %v167_v10 = vld [vmem:[%s701_s1 + $0x70] sm:$0xff] (!%p114_p2) }
   0x9   : > { %536 = vmatpush3.bf16.msra.mxu0 (!%p114_p2), %v533_v3  ;;  %573 = vmatpush3.bf16.msra.mxu1 (!%p114_p2), %v533_v3  ;;  %v545_v12 = vpack.c.bf16 (!%p114_p2), %v167_v10, %v166_v9  ;;  %v168_v14 = vld [vmem:[%s701_s1 + $0x80] sm:$0xff] (!%p114_p2)  ;;  %v169_v15 = vld [vmem:[%s701_s1 + $0x90] sm:$0xff] (!%p114_p2) }
   0xa   : > { %538 = vmatprep.subr.bf16.mxu0 (!%p114_p2), %v537_v5  ;;  %566 = vmatprep.subr.bf16.mxu1 (!%p114_p2), %v537_v5  ;;  %v549_v16 = vpack.c.bf16 (!%p114_p2), %v169_v15, %v168_v14  ;;  %v170_v17 = vld [vmem:[%s701_s1 + $0xa0] sm:$0xff] (!%p114_p2)  ;;  %v171_v18 = vld [vmem:[%s701_s1 + $0xb0] sm:$0xff] (!%p114_p2) }
   0xb   : > { %v553_v19 = vpack.c.bf16 (!%p114_p2), %v171_v18, %v170_v17  ;;  %v172_v20 = vld [vmem:[%s701_s1 + $0xc0] sm:$0xff] (!%p114_p2)  ;;  %v173_v21 = vld [vmem:[%s701_s1 + $0xd0] sm:$0xff] (!%p114_p2) }
   0xc   : > { %v557_v22 = vpack.c.bf16 (!%p114_p2), %v173_v21, %v172_v20  ;;  %v174_v23 = vld [vmem:[%s701_s1 + $0xe0] sm:$0xff] (!%p114_p2)  ;;  %v175_v24 = vld [vmem:[%s701_s1 + $0xf0] sm:$0xff] (!%p114_p2) }
   0xd   : > { %s704_s17 = smov (!%p135_p3, %s440_s17), 63  ;;  %540 = vmatpush3.bf16.msra.mxu0 %v537_v5  ;;  %574 = vmatpush3.bf16.msra.mxu1 %v537_v5  ;;  %v561_v25 = vpack.c.bf16 %v175_v24, %v174_v23  ;;  %s706_s10 = smov (!%p140_p4, %s618_s10), 3 }
   0xe   : > { %s441_s24 = sshll.u32 %s704_s17, 3  ;;  %542 = vmatprep.subr.bf16.mxu0 %v541_v8  ;;  %567 = vmatprep.subr.bf16.mxu1 %v541_v8  ;;  %s442_s22 = sshll.u32 %s706_s10, 1 }
   0xf   : > { %s650_s3 = scalar_lea.vmem %s700_s0, %s441_s24  ;;  %s143_s25 = scalar_lea.vmem %s702_s2, %s442_s22 }
  0x10   : > { %v144_v11 = vld [vmem:[%s650_s3] sm:$0xff]  ;;  %v145_v26 = vld [vmem:[%s650_s3 + $0x8] sm:$0xff]  ;;  %v146_v28 = vld [vmem:[%s650_s3 + $0x10] sm:$0xff] }
  0x11   : > { %v152_v13 = vld [vmem:[%s650_s3 + $0x40] sm:$0xff]  ;;  %509 = vmatprep.mubr.f32.mxu0 %v144_v11  ;;  %544 = vmatpush3.bf16.msra.mxu0 %v541_v8  ;;  %v153_v27 = vld [vmem:[%s650_s3 + $0x48] sm:$0xff]  ;;  %v154_v29 = vld [vmem:[%s650_s3 + $0x50] sm:$0xff] }
  0x12   : > { %521 = vmatprep.mubr.f32.mxu1 %v152_v13  ;;  %575 = vmatpush3.bf16.msra.mxu1 %v541_v8  ;;  %v147_v30 = vld [vmem:[%s650_s3 + $0x18] sm:$0xff]  ;;  %v148_v32 = vld [vmem:[%s650_s3 + $0x20] sm:$0xff]  ;;  %v149_v34 = vld [vmem:[%s650_s3 + $0x28] sm:$0xff] }
  0x13   : > { %546 = vmatprep.subr.bf16.mxu0 %v545_v12  ;;  %568 = vmatprep.subr.bf16.mxu1 %v545_v12  ;;  %v155_v31 = vld [vmem:[%s650_s3 + $0x58] sm:$0xff]  ;;  %v156_v33 = vld [vmem:[%s650_s3 + $0x60] sm:$0xff]  ;;  %v157_v35 = vld [vmem:[%s650_s3 + $0x68] sm:$0xff] }
  0x14   : > { %v150_v36 = vld [vmem:[%s650_s3 + $0x30] sm:$0xff]  ;;  %v151_v38 = vld [vmem:[%s650_s3 + $0x38] sm:$0xff] }
  0x15   : > { %548 = vmatpush3.bf16.msra.mxu0 %v545_v12  ;;  %v158_v37 = vld [vmem:[%s650_s3 + $0x70] sm:$0xff]  ;;  %v159_v39 = vld [vmem:[%s650_s3 + $0x78] sm:$0xff] }
  0x16   : > { %576 = vmatpush3.bf16.msra.mxu1 %v545_v12  ;;  %550 = vmatprep.subr.bf16.mxu0 %v549_v16 }
  0x17   : > { %569 = vmatprep.subr.bf16.mxu1 %v549_v16 }
  0x19   : > { %552 = vmatpush3.bf16.msra.mxu0 %v549_v16 }
  0x1a   : > { %577 = vmatpush3.bf16.msra.mxu1 %v549_v16  ;;  %554 = vmatprep.subr.bf16.mxu0 %v553_v19 }
  0x1b   : > { %570 = vmatprep.subr.bf16.mxu1 %v553_v19 }
  0x1d   : > { %556 = vmatpush3.bf16.msra.mxu0 %v553_v19 }
  0x1e   : > { %578 = vmatpush3.bf16.msra.mxu1 %v553_v19  ;;  %558 = vmatprep.subr.bf16.mxu0 %v557_v22 }
  0x1f   : > { %571 = vmatprep.subr.bf16.mxu1 %v557_v22 }
  0x21   : > { %560 = vmatpush3.bf16.msra.mxu0 %v557_v22 }
  0x22   : > { %579 = vmatpush3.bf16.msra.mxu1 %v557_v22  ;;  %562 = vmatprep.subr.bf16.mxu0 %v561_v25 }
  0x23   : > { %572 = vmatprep.subr.bf16.mxu1 %v561_v25 }
  0x25   : > { %564 = vmatpush3.bf16.msra.mxu0 %v561_v25 }
  0x26   : > { %580 = vmatpush3.bf16.msra.mxu1 %v561_v25 }
  0x28   : > { %510 = vmatmul.mubr.f32.vlgmr.msra.gmra.mrb[0].mxu0 %v145_v26 }
  0x29   : > { %522 = vmatmul.mubr.f32.vlgmr.msra.gmra.mrb[0].mxu1 %v153_v27  ;;  %512 = vmatprep.mubr.f32.mxu0 %v146_v28 }
  0x2a   : > { %524 = vmatprep.mubr.f32.mxu1 %v154_v29 }
  0x2c   : > { %513 = vmatmul.mubr.f32.gmra.mrb[2].mxu0 %v147_v30 }
  0x2d   : > { %525 = vmatmul.mubr.f32.gmra.mrb[2].mxu1 %v155_v31  ;;  %515 = vmatprep.mubr.f32.mxu0 %v148_v32 }
  0x2e   : > { %527 = vmatprep.mubr.f32.mxu1 %v156_v33 }
  0x30   : > { %516 = vmatmul.mubr.f32.gmra.mrb[4].mxu0 %v149_v34 }
  0x31   : > { %528 = vmatmul.mubr.f32.gmra.mrb[4].mxu1 %v157_v35  ;;  %518 = vmatprep.mubr.f32.mxu0 %v150_v36 }
  0x32   : > { %530 = vmatprep.mubr.f32.mxu1 %v158_v37 }
  0x34   : > { %519 = vmatmul.mubr.f32.gmra.mrb[6].mxu0 %v151_v38 }
  0x35   : > { %531 = vmatmul.mubr.f32.gmra.mrb[6].mxu1 %v159_v39 }
  0xfb   : > { %v511_v40 = vpop.f32.mrb[0].mxu0 }
  0xfc   : > { %v523_v41 = vpop.f32.mrb[0].mxu1  ;;  %v343_v42 = vmul.f32 %v511_v40, %v511_v40  ;;  %v242_v43 = vpop.f32.mrb[1].mxu0 }
  0xfd   : > { %v282_v44 = vpop.f32.mrb[1].mxu1  ;;  %v321_v45 = vadd.f32 %v511_v40, %v242_v43  ;;  %v342_v46 = vmul.f32 %v242_v43, %v242_v43  ;;  %v351_v16 = vmul.f32 %v523_v41, %v523_v41 }
  0xfe   : > { %v350_v13 = vmul.f32 %v282_v44, %v282_v44 }
  0xff   : > { %v358_v47 = vadd.f32 %v343_v42, %v342_v46  ;;  %v514_v48 = vpop.f32.mrb[2].mxu0 }
 0x100   : > { %v526_v49 = vpop.f32.mrb[2].mxu1  ;;  %v252_v50 = vpop.f32.mrb[3].mxu0  ;;  %v345_v54 = vmul.f32 %v514_v48, %v514_v48 }
 0x101   : > { %v292_v51 = vpop.f32.mrb[3].mxu1  ;;  %v322_v52 = vadd.f32 %v321_v45, %v252_v50  ;;  %v344_v53 = vmul.f32 %v252_v50, %v252_v50  ;;  %v353_v22 = vmul.f32 %v526_v49, %v526_v49 }
 0x102   : > { %v352_v19 = vmul.f32 %v292_v51, %v292_v51 }
 0x103   : > { %v359_v55 = vadd.f32 %v358_v47, %v344_v53  ;;  %v517_v56 = vpop.f32.mrb[4].mxu0  ;;  %v323_v57 = vadd.f32 %v514_v48, %v322_v52 }
 0x104   : > { %v529_v58 = vpop.f32.mrb[4].mxu1  ;;  %v262_v59 = vpop.f32.mrb[5].mxu0  ;;  %v347_v0 = vmul.f32 %v517_v56, %v517_v56 }
 0x105   : > { %v302_v60 = vpop.f32.mrb[5].mxu1  ;;  %v324_v61 = vadd.f32 %v323_v57, %v262_v59  ;;  %v346_v62 = vmul.f32 %v262_v59, %v262_v59  ;;  %v360_v63 = vadd.f32 %v359_v55, %v345_v54  ;;  %v355_v28 = vmul.f32 %v529_v58, %v529_v58 }
 0x106   : > { %v354_v25 = vmul.f32 %v302_v60, %v302_v60 }
 0x107   : > { %v361_v1 = vadd.f32 %v360_v63, %v346_v62  ;;  %v520_v2 = vpop.f32.mrb[6].mxu0  ;;  %v325_v3 = vadd.f32 %v517_v56, %v324_v61 }
 0x108   : > { %v532_v4 = vpop.f32.mrb[6].mxu1  ;;  %v272_v5 = vpop.f32.mrb[7].mxu0  ;;  %v349_v10 = vmul.f32 %v520_v2, %v520_v2 }
 0x109   : > { %v312_v6 = vpop.f32.mrb[7].mxu1  ;;  %v326_v7 = vadd.f32 %v325_v3, %v272_v5  ;;  %v348_v8 = vmul.f32 %v272_v5, %v272_v5  ;;  %v362_v9 = vadd.f32 %v361_v1, %v347_v0  ;;  %v357_v34 = vmul.f32 %v532_v4, %v532_v4 }
 0x10a   : > { %v356_v31 = vmul.f32 %v312_v6, %v312_v6 }
 0x10b   : > { %v327_v11 = vadd.f32 %v520_v2, %v326_v7  ;;  %v363_v12 = vadd.f32 %v362_v9, %v348_v8 }
 0x10d   : > { %v364_v14 = vadd.f32 %v363_v12, %v349_v10  ;;  %v328_v15 = vadd.f32 %v327_v11, %v282_v44 }
 0x10f   : > { %v365_v17 = vadd.f32 %v364_v14, %v350_v13  ;;  %v329_v18 = vadd.f32 %v523_v41, %v328_v15 }
 0x111   : > { %v330_v20 = vadd.f32 %v329_v18, %v292_v51  ;;  %v366_v21 = vadd.f32 %v365_v17, %v351_v16 }
 0x113   : > { %v367_v23 = vadd.f32 %v366_v21, %v352_v19  ;;  %v331_v24 = vadd.f32 %v526_v49, %v330_v20 }
 0x115   : > { %v332_v26 = vadd.f32 %v331_v24, %v302_v60  ;;  %v368_v27 = vadd.f32 %v367_v23, %v353_v22 }
 0x117   : > { %v369_v29 = vadd.f32 %v368_v27, %v354_v25  ;;  %v333_v30 = vadd.f32 %v529_v58, %v332_v26 }
 0x119   : > { %v334_v32 = vadd.f32 %v333_v30, %v312_v6  ;;  %v370_v33 = vadd.f32 %v369_v29, %v355_v28 }
 0x11b   : > { %v335_v35 = vadd.f32 %v532_v4, %v334_v32  ;;  %v371_v36 = vadd.f32 %v370_v33, %v356_v31 }
 0x11d   : > { %v336_v37 = vrot.slane %v335_v35, 4  ;;  %v372_v38 = vadd.f32 %v371_v36, %v357_v34 }
 0x11f   : > { %v337_v39 = vadd.f32 %v336_v37, %v335_v35  ;;  %v373_v40 = vrot.slane %v372_v38, 4 }
 0x121   : > { %v338_v41 = vrot.slane %v337_v39, 2  ;;  %v374_v42 = vadd.f32 %v373_v40, %v372_v38 }
 0x123   : > { %v339_v43 = vadd.f32 %v338_v41, %v337_v39  ;;  %v375_v44 = vrot.slane %v374_v42, 2 }
 0x125   : > { %v340_v45 = vrot.slane %v339_v43, 1  ;;  %v376_v46 = vadd.f32 %v375_v44, %v374_v42 }
 0x127   : > { %v377_v47 = vrot.slane %v376_v46, 1  ;;  %v341_v48 = vadd.f32 %v340_v45, %v339_v43 }
 0x129   : > { %v378_v49 = vadd.f32 %v377_v47, %v376_v46 }
 0x12b   : > { %v380_v50 = vsel %vm379_vm0, %v341_v48, %v378_v49 }
 0x12c   : > { %381 = vst [vmem:[%s143_s25] sm:$0x3] %v380_v50 }
 0x12d PF: > { %s12_s9 = sadd.s32 1, %s595_s9  }
 0x12e   : > { %p9_p5 = scmp.ge.s32.totalorder %s12_s9, 6  }
 0x130   :  { %11 = sbr.rel (!%p9_p5) target bundleno = 1 (0x1), region = 58 }

// kernel: efficient_res_block_3d.3
= control target key start
LH: loop header
LB: loop body
LE: loop exit
PB: predicated region body
PF: predicated region fallthrough
CT: control target
= control target key end

     0   :  { %s664_s15 = smov 0   ;;  %s880_s0 = inlined_call_operand.vmem [shape: f32[512,128], index: 0, kind: input, shape index: {}]   ;;  %s881_s1 = inlined_call_operand.vmem [shape: f32[128,256], index: 1, kind: input, shape index: {}]   ;;  %s882_s2 = inlined_call_operand.vmem [shape: f32[1,128], index: 2, kind: input, shape index: {}]   ;;  %s883_s3 = inlined_call_operand.vmem [shape: f32[1,128], index: 3, kind: input, shape index: {}]   ;;  %s884_s4 = inlined_call_operand.vmem [shape: f32[512,128], index: 4, kind: output, shape index: {}]  }
   0x1 LB: > { %s560_s16 = sadd.s32 4294967295, %s636_s15   ;;  %p564_p0 = scmp.ge.s32.totalorder %s636_s15, 1  ;;  %s636_s15 = sphi %s664_s15, %s14_s15  }
   0x2   : > { %p163_p1 = scmp.lt.s32.totalorder %s636_s15, 5 }
   0x4   : > { %p164_p2 = pnand %p564_p0, %p163_p1 }
   0x5   : > { %v218_v0 = vld [vmem:[%s881_s1 + $0x8] sm:$0xff] (!%p164_p2)  ;;  %v220_v1 = vld [vmem:[%s881_s1 + $0x18] sm:$0xff] (!%p164_p2)  ;;  %v217_v2 = vld [vmem:[%s881_s1] sm:$0xff] (!%p164_p2)  ;;  %v638_v7 = vmov (!%p164_p2), 0.0   ;;  %s565_s11 = sshll.u32 (!%p164_p2), %s560_s16, 4 }
   0x6   : > { %167 = sbr.rel (%p164_p2) target bundleno = 289 (0x121), region = 36  ;;  %v573_v3 = vpack.c.bf16 (!%p164_p2), %v220_v1, %v218_v0  ;;  %v219_v4 = vld [vmem:[%s881_s1 + $0x10] sm:$0xff] (!%p164_p2)  ;;  %v222_v5 = vld [vmem:[%s881_s1 + $0x28] sm:$0xff] (!%p164_p2)  ;;  %v224_v6 = vld [vmem:[%s881_s1 + $0x38] sm:$0xff] (!%p164_p2)  ;;  %313 = vmatprep.mubr.f32.mxu0 (!%p164_p2), %v638_v7  ;;  %361 = vmatprep.mubr.f32.mxu1 (!%p164_p2), %v638_v7  ;;  %p190_p3 = scmp.lt.s32.totalorder (!%p164_p2), %s565_s11, 63 }
   0x7   : > { %v575_v8 = vpack.c.bf16 (!%p164_p2), %v219_v4, %v217_v2  ;;  %v577_v9 = vpack.c.bf16 (!%p164_p2), %v224_v6, %v222_v5  ;;  %v221_v10 = vld [vmem:[%s881_s1 + $0x20] sm:$0xff] (!%p164_p2)  ;;  %v223_v11 = vld [vmem:[%s881_s1 + $0x30] sm:$0xff] (!%p164_p2)  ;;  %v226_v12 = vld [vmem:[%s881_s1 + $0x48] sm:$0xff] (!%p164_p2) }
   0x8   : > { %574 = vmatprep.subr.bf16.mxu0 (!%p164_p2), %v573_v3  ;;  %605 = vmatprep.subr.bf16.mxu1 (!%p164_p2), %v573_v3  ;;  %v228_v13 = vld [vmem:[%s881_s1 + $0x58] sm:$0xff] (!%p164_p2)  ;;  %v579_v14 = vpack.c.bf16 (!%p164_p2), %v223_v11, %v221_v10  ;;  %v225_v16 = vld [vmem:[%s881_s1 + $0x40] sm:$0xff] (!%p164_p2)  ;;  %v227_v17 = vld [vmem:[%s881_s1 + $0x50] sm:$0xff] (!%p164_p2) }
   0x9   : > { %576 = vmatpush1.bf16.msra.mxu0 (!%p164_p2), %v575_v8  ;;  %613 = vmatpush1.bf16.msra.mxu1 (!%p164_p2), %v575_v8  ;;  %v581_v15 = vpack.c.bf16 (!%p164_p2), %v228_v13, %v226_v12  ;;  %v230_v18 = vld [vmem:[%s881_s1 + $0x68] sm:$0xff] (!%p164_p2)  ;;  %v232_v19 = vld [vmem:[%s881_s1 + $0x78] sm:$0xff] (!%p164_p2)  ;;  %v583_v20 = vpack.c.bf16 (!%p164_p2), %v227_v17, %v225_v16  ;;  %v229_v22 = vld [vmem:[%s881_s1 + $0x60] sm:$0xff] (!%p164_p2) }
   0xa   : > { %578 = vmatprep.subr.bf16.mxu0 (!%p164_p2), %v577_v9  ;;  %606 = vmatprep.subr.bf16.mxu1 (!%p164_p2), %v577_v9  ;;  %v585_v21 = vpack.c.bf16 (!%p164_p2), %v232_v19, %v230_v18  ;;  %v231_v23 = vld [vmem:[%s881_s1 + $0x70] sm:$0xff] (!%p164_p2)  ;;  %v234_v24 = vld [vmem:[%s881_s1 + $0x88] sm:$0xff] (!%p164_p2)  ;;  %v236_v25 = vld [vmem:[%s881_s1 + $0x98] sm:$0xff] (!%p164_p2) }
   0xb   : > { %v587_v26 = vpack.c.bf16 (!%p164_p2), %v231_v23, %v229_v22  ;;  %v589_v27 = vpack.c.bf16 (!%p164_p2), %v236_v25, %v234_v24  ;;  %v233_v28 = vld [vmem:[%s881_s1 + $0x80] sm:$0xff] (!%p164_p2)  ;;  %v235_v29 = vld [vmem:[%s881_s1 + $0x90] sm:$0xff] (!%p164_p2)  ;;  %v238_v30 = vld [vmem:[%s881_s1 + $0xa8] sm:$0xff] (!%p164_p2) }
   0xc   : > { %v240_v31 = vld [vmem:[%s881_s1 + $0xb8] sm:$0xff] (!%p164_p2)  ;;  %v591_v32 = vpack.c.bf16 (!%p164_p2), %v235_v29, %v233_v28  ;;  %v237_v34 = vld [vmem:[%s881_s1 + $0xa0] sm:$0xff] (!%p164_p2)  ;;  %v239_v35 = vld [vmem:[%s881_s1 + $0xb0] sm:$0xff] (!%p164_p2) }
   0xd   : > { %580 = vmatpush1.bf16.msra.mxu0 %v579_v14  ;;  %614 = vmatpush1.bf16.msra.mxu1 %v579_v14  ;;  %v593_v33 = vpack.c.bf16 %v240_v31, %v238_v30  ;;  %v242_v36 = vld [vmem:[%s881_s1 + $0xc8] sm:$0xff]  ;;  %v244_v37 = vld [vmem:[%s881_s1 + $0xd8] sm:$0xff]  ;;  %v595_v38 = vpack.c.bf16 %v239_v35, %v237_v34  ;;  %v241_v40 = vld [vmem:[%s881_s1 + $0xc0] sm:$0xff]  ;;  %s886_s11 = smov (!%p190_p3, %s565_s11), 63 }
   0xe   : > { %582 = vmatprep.subr.bf16.mxu0 %v581_v15  ;;  %607 = vmatprep.subr.bf16.mxu1 %v581_v15  ;;  %v597_v39 = vpack.c.bf16 %v244_v37, %v242_v36  ;;  %v243_v41 = vld [vmem:[%s881_s1 + $0xd0] sm:$0xff]  ;;  %v246_v42 = vld [vmem:[%s881_s1 + $0xe8] sm:$0xff]  ;;  %v248_v43 = vld [vmem:[%s881_s1 + $0xf8] sm:$0xff]  ;;  %s566_s7 = sshll.u32 %s886_s11, 3 }
   0xf   : > { %v599_v44 = vpack.c.bf16 %v243_v41, %v241_v40  ;;  %v601_v45 = vpack.c.bf16 %v248_v43, %v246_v42  ;;  %v245_v46 = vld [vmem:[%s881_s1 + $0xe0] sm:$0xff]  ;;  %v247_v47 = vld [vmem:[%s881_s1 + $0xf0] sm:$0xff]  ;;  %s780_s10 = scalar_lea.vmem %s880_s0, %s566_s7  ;;  %s833_s20 = scalar_lea.vmem %s884_s4, %s566_s7 }
  0x10   : > { %v603_v48 = vpack.c.bf16 %v247_v47, %v245_v46  ;;  %v201_v49 = vld [vmem:[%s780_s10] sm:$0xff]  ;;  %v202_v51 = vld [vmem:[%s780_s10 + $0x8] sm:$0xff]  ;;  %v203_v53 = vld [vmem:[%s780_s10 + $0x10] sm:$0xff] }
  0x11   : > { %584 = vmatpush1.bf16.msra.mxu0 %v583_v20  ;;  %615 = vmatpush1.bf16.msra.mxu1 %v583_v20  ;;  %v209_v50 = vld [vmem:[%s780_s10 + $0x40] sm:$0xff]  ;;  %v210_v52 = vld [vmem:[%s780_s10 + $0x48] sm:$0xff]  ;;  %v211_v54 = vld [vmem:[%s780_s10 + $0x50] sm:$0xff] }
  0x12   : > { %586 = vmatprep.subr.bf16.mxu0 %v585_v21  ;;  %608 = vmatprep.subr.bf16.mxu1 %v585_v21  ;;  %v204_v55 = vld [vmem:[%s780_s10 + $0x18] sm:$0xff]  ;;  %v205_v57 = vld [vmem:[%s780_s10 + $0x20] sm:$0xff]  ;;  %v206_v59 = vld [vmem:[%s780_s10 + $0x28] sm:$0xff] }
  0x13   : > { %v212_v56 = vld [vmem:[%s780_s10 + $0x58] sm:$0xff]  ;;  %v213_v58 = vld [vmem:[%s780_s10 + $0x60] sm:$0xff]  ;;  %v214_v60 = vld [vmem:[%s780_s10 + $0x68] sm:$0xff] }
  0x14   : > { %v207_v61 = vld [vmem:[%s780_s10 + $0x30] sm:$0xff]  ;;  %v208_v63 = vld [vmem:[%s780_s10 + $0x38] sm:$0xff]  ;;  %v815_v1 = vld [vmem:[%s882_s2] ss:$0 sm:$0xff] }
  0x15   : > { %588 = vmatpush1.bf16.msra.mxu0 %v587_v26  ;;  %616 = vmatpush1.bf16.msra.mxu1 %v587_v26  ;;  %v215_v62 = vld [vmem:[%s780_s10 + $0x70] sm:$0xff]  ;;  %v216_v0 = vld [vmem:[%s780_s10 + $0x78] sm:$0xff]  ;;  %v820_v3 = vld [vmem:[%s883_s3] ss:$0 sm:$0xff] }
  0x16   : > { %590 = vmatprep.subr.bf16.mxu0 %v589_v27  ;;  %609 = vmatprep.subr.bf16.mxu1 %v589_v27 }
  0x19   : > { %592 = vmatpush1.bf16.msra.mxu0 %v591_v32  ;;  %617 = vmatpush1.bf16.msra.mxu1 %v591_v32 }
  0x1a   : > { %594 = vmatprep.subr.bf16.mxu0 %v593_v33  ;;  %610 = vmatprep.subr.bf16.mxu1 %v593_v33 }
  0x1d   : > { %596 = vmatpush1.bf16.msra.mxu0 %v595_v38  ;;  %618 = vmatpush1.bf16.msra.mxu1 %v595_v38 }
  0x1e   : > { %598 = vmatprep.subr.bf16.mxu0 %v597_v39  ;;  %611 = vmatprep.subr.bf16.mxu1 %v597_v39 }
  0x21   : > { %600 = vmatpush1.bf16.msra.mxu0 %v599_v44  ;;  %619 = vmatpush1.bf16.msra.mxu1 %v599_v44 }
  0x22   : > { %602 = vmatprep.subr.bf16.mxu0 %v601_v45  ;;  %612 = vmatprep.subr.bf16.mxu1 %v601_v45 }
  0x25   : > { %604 = vmatpush1.bf16.msra.mxu0 %v603_v48  ;;  %620 = vmatpush1.bf16.msra.mxu1 %v603_v48 }
  0x28   : > { %314 = vmatmul.mubr.f32.vlgmr.msra.gmra.mrb[0].mxu0 %v201_v49  ;;  %362 = vmatmul.mubr.f32.vlgmr.msra.gmra.mrb[0].mxu1 %v209_v50 }
  0x29   : > { %319 = vmatprep.mubr.f32.mxu0 %v638_v7  ;;  %367 = vmatprep.mubr.f32.mxu1 %v638_v7 }
  0x2c   : > { %320 = vmatmul.mubr.f32.gmra.mrb[2].mxu0 %v202_v51  ;;  %368 = vmatmul.mubr.f32.gmra.mrb[2].mxu1 %v210_v52 }
  0x2d   : > { %325 = vmatprep.mubr.f32.mxu0 %v638_v7  ;;  %373 = vmatprep.mubr.f32.mxu1 %v638_v7 }
  0x30   : > { %326 = vmatmul.mubr.f32.gmra.mrb[4].mxu0 %v203_v53  ;;  %374 = vmatmul.mubr.f32.gmra.mrb[4].mxu1 %v211_v54 }
  0x31   : > { %331 = vmatprep.mubr.f32.mxu0 %v638_v7  ;;  %379 = vmatprep.mubr.f32.mxu1 %v638_v7 }
  0x34   : > { %332 = vmatmul.mubr.f32.gmra.mrb[6].mxu0 %v204_v55  ;;  %380 = vmatmul.mubr.f32.gmra.mrb[6].mxu1 %v212_v56 }
  0x35   : > { %337 = vmatprep.mubr.f32.mxu0 %v638_v7  ;;  %385 = vmatprep.mubr.f32.mxu1 %v638_v7 }
  0x38   : > { %338 = vmatmul.mubr.f32.gmra.mrb[8].mxu0 %v205_v57  ;;  %386 = vmatmul.mubr.f32.gmra.mrb[8].mxu1 %v213_v58 }
  0x39   : > { %343 = vmatprep.mubr.f32.mxu0 %v638_v7  ;;  %391 = vmatprep.mubr.f32.mxu1 %v638_v7 }
  0x3c   : > { %344 = vmatmul.mubr.f32.gmra.mrb[10].mxu0 %v206_v59  ;;  %392 = vmatmul.mubr.f32.gmra.mrb[10].mxu1 %v214_v60 }
  0x3d   : > { %349 = vmatprep.mubr.f32.mxu0 %v638_v7  ;;  %397 = vmatprep.mubr.f32.mxu1 %v638_v7 }
  0x40   : > { %350 = vmatmul.mubr.f32.gmra.mrb[12].mxu0 %v207_v61  ;;  %398 = vmatmul.mubr.f32.gmra.mrb[12].mxu1 %v215_v62 }
  0x41   : > { %355 = vmatprep.mubr.f32.mxu0 %v638_v7  ;;  %403 = vmatprep.mubr.f32.mxu1 %v638_v7 }
  0x44   : > { %356 = vmatmul.mubr.f32.gmra.mrb[14].mxu0 %v208_v63  ;;  %404 = vmatmul.mubr.f32.gmra.mrb[14].mxu1 %v216_v0 }
  0xfb   : > { %v315_v2 = vpop.f32.mrb[0].mxu0  ;;  %v363_v4 = vpop.f32.mrb[0].mxu1 }
  0xfc   : > { %v417_v5 = vmul.f32 %v815_v1, %v315_v2  ;;  %v425_v6 = vmul.f32 %v815_v1, %v363_v4  ;;  %v317_v7 = vpop.f32.mrb[1].mxu0  ;;  %v365_v8 = vpop.f32.mrb[1].mxu1 }
  0xfe   : > { %v440_v9 = vadd.f32 %v820_v3, %v417_v5  ;;  %v448_v10 = vadd.f32 %v820_v3, %v425_v6 }
  0xff   : > { %v321_v11 = vpop.f32.mrb[2].mxu0  ;;  %v369_v12 = vpop.f32.mrb[2].mxu1 }
 0x100   : > { %v456_v13 = vmax.f32 %v440_v9, 0.0  ;;  %v464_v14 = vmax.f32 %v448_v10, 0.0  ;;  %v418_v15 = vmul.f32 %v815_v1, %v321_v11  ;;  %v426_v16 = vmul.f32 %v815_v1, %v369_v12  ;;  %v323_v17 = vpop.f32.mrb[3].mxu0  ;;  %v371_v18 = vpop.f32.mrb[3].mxu1 }
 0x102   : > { %v472_v19 = vadd.f32 %v456_v13, %v317_v7  ;;  %v480_v20 = vadd.f32 %v464_v14, %v365_v8  ;;  %v441_v21 = vadd.f32 %v820_v3, %v418_v15  ;;  %v449_v22 = vadd.f32 %v820_v3, %v426_v16 }
 0x103   : > { %v327_v23 = vpop.f32.mrb[4].mxu0  ;;  %v375_v24 = vpop.f32.mrb[4].mxu1 }
 0x104   : > { %488 = vst [vmem:[%s833_s20] sm:$0xff] %v472_v19  ;;  %496 = vst [vmem:[%s833_s20 + $0x40] sm:$0xff] %v480_v20  ;;  %v457_v25 = vmax.f32 %v441_v21, 0.0  ;;  %v465_v26 = vmax.f32 %v449_v22, 0.0  ;;  %v419_v27 = vmul.f32 %v815_v1, %v327_v23  ;;  %v427_v28 = vmul.f32 %v815_v1, %v375_v24  ;;  %v329_v29 = vpop.f32.mrb[5].mxu0  ;;  %v377_v30 = vpop.f32.mrb[5].mxu1 }
 0x106   : > { %v473_v31 = vadd.f32 %v457_v25, %v323_v17  ;;  %v481_v32 = vadd.f32 %v465_v26, %v371_v18  ;;  %v442_v33 = vadd.f32 %v820_v3, %v419_v27  ;;  %v450_v34 = vadd.f32 %v820_v3, %v427_v28 }
 0x107   : > { %v333_v35 = vpop.f32.mrb[6].mxu0  ;;  %v381_v36 = vpop.f32.mrb[6].mxu1 }
 0x108   : > { %489 = vst [vmem:[%s833_s20 + $0x8] sm:$0xff] %v473_v31  ;;  %497 = vst [vmem:[%s833_s20 + $0x48] sm:$0xff] %v481_v32  ;;  %v458_v37 = vmax.f32 %v442_v33, 0.0  ;;  %v466_v38 = vmax.f32 %v450_v34, 0.0  ;;  %v420_v39 = vmul.f32 %v815_v1, %v333_v35  ;;  %v428_v40 = vmul.f32 %v815_v1, %v381_v36  ;;  %v335_v41 = vpop.f32.mrb[7].mxu0  ;;  %v383_v42 = vpop.f32.mrb[7].mxu1 }
 0x10a   : > { %v474_v43 = vadd.f32 %v458_v37, %v329_v29  ;;  %v482_v44 = vadd.f32 %v466_v38, %v377_v30  ;;  %v443_v45 = vadd.f32 %v820_v3, %v420_v39  ;;  %v451_v46 = vadd.f32 %v820_v3, %v428_v40 }
 0x10b   : > { %v339_v47 = vpop.f32.mrb[8].mxu0  ;;  %v387_v48 = vpop.f32.mrb[8].mxu1 }
 0x10c   : > { %490 = vst [vmem:[%s833_s20 + $0x10] sm:$0xff] %v474_v43  ;;  %498 = vst [vmem:[%s833_s20 + $0x50] sm:$0xff] %v482_v44  ;;  %v459_v49 = vmax.f32 %v443_v45, 0.0  ;;  %v467_v50 = vmax.f32 %v451_v46, 0.0  ;;  %v421_v51 = vmul.f32 %v815_v1, %v339_v47  ;;  %v429_v52 = vmul.f32 %v815_v1, %v387_v48  ;;  %v341_v53 = vpop.f32.mrb[9].mxu0  ;;  %v389_v54 = vpop.f32.mrb[9].mxu1 }
 0x10e   : > { %v475_v55 = vadd.f32 %v459_v49, %v335_v41  ;;  %v483_v56 = vadd.f32 %v467_v50, %v383_v42  ;;  %v444_v57 = vadd.f32 %v820_v3, %v421_v51  ;;  %v452_v58 = vadd.f32 %v820_v3, %v429_v52 }
 0x10f   : > { %v345_v59 = vpop.f32.mrb[10].mxu0  ;;  %v393_v60 = vpop.f32.mrb[10].mxu1 }
 0x110   : > { %491 = vst [vmem:[%s833_s20 + $0x18] sm:$0xff] %v475_v55  ;;  %499 = vst [vmem:[%s833_s20 + $0x58] sm:$0xff] %v483_v56  ;;  %v460_v61 = vmax.f32 %v444_v57, 0.0  ;;  %v468_v62 = vmax.f32 %v452_v58, 0.0  ;;  %v422_v63 = vmul.f32 %v815_v1, %v345_v59  ;;  %v430_v0 = vmul.f32 %v815_v1, %v393_v60  ;;  %v347_v2 = vpop.f32.mrb[11].mxu0  ;;  %v395_v4 = vpop.f32.mrb[11].mxu1 }
 0x112   : > { %v476_v5 = vadd.f32 %v460_v61, %v341_v53  ;;  %v484_v6 = vadd.f32 %v468_v62, %v389_v54  ;;  %v445_v7 = vadd.f32 %v820_v3, %v422_v63  ;;  %v453_v8 = vadd.f32 %v820_v3, %v430_v0 }
 0x113   : > { %v351_v9 = vpop.f32.mrb[12].mxu0  ;;  %v399_v10 = vpop.f32.mrb[12].mxu1 }
 0x114   : > { %492 = vst [vmem:[%s833_s20 + $0x20] sm:$0xff] %v476_v5  ;;  %500 = vst [vmem:[%s833_s20 + $0x60] sm:$0xff] %v484_v6  ;;  %v461_v11 = vmax.f32 %v445_v7, 0.0  ;;  %v469_v12 = vmax.f32 %v453_v8, 0.0  ;;  %v423_v13 = vmul.f32 %v815_v1, %v351_v9  ;;  %v431_v14 = vmul.f32 %v815_v1, %v399_v10  ;;  %v353_v15 = vpop.f32.mrb[13].mxu0  ;;  %v401_v16 = vpop.f32.mrb[13].mxu1 }
 0x116   : > { %v477_v17 = vadd.f32 %v461_v11, %v347_v2  ;;  %v485_v18 = vadd.f32 %v469_v12, %v395_v4  ;;  %v446_v19 = vadd.f32 %v820_v3, %v423_v13  ;;  %v454_v20 = vadd.f32 %v820_v3, %v431_v14 }
 0x117   : > { %v357_v21 = vpop.f32.mrb[14].mxu0  ;;  %v405_v22 = vpop.f32.mrb[14].mxu1 }
 0x118   : > { %493 = vst [vmem:[%s833_s20 + $0x28] sm:$0xff] %v477_v17  ;;  %501 = vst [vmem:[%s833_s20 + $0x68] sm:$0xff] %v485_v18  ;;  %v462_v23 = vmax.f32 %v446_v19, 0.0  ;;  %v470_v24 = vmax.f32 %v454_v20, 0.0  ;;  %v424_v25 = vmul.f32 %v815_v1, %v357_v21  ;;  %v432_v26 = vmul.f32 %v815_v1, %v405_v22  ;;  %v359_v27 = vpop.f32.mrb[15].mxu0  ;;  %v407_v28 = vpop.f32.mrb[15].mxu1 }
 0x11a   : > { %v478_v29 = vadd.f32 %v462_v23, %v353_v15  ;;  %v486_v30 = vadd.f32 %v470_v24, %v401_v16  ;;  %v447_v31 = vadd.f32 %v820_v3, %v424_v25  ;;  %v455_v32 = vadd.f32 %v820_v3, %v432_v26 }
 0x11c   : > { %494 = vst [vmem:[%s833_s20 + $0x30] sm:$0xff] %v478_v29  ;;  %502 = vst [vmem:[%s833_s20 + $0x70] sm:$0xff] %v486_v30  ;;  %v463_v33 = vmax.f32 %v447_v31, 0.0  ;;  %v471_v34 = vmax.f32 %v455_v32, 0.0 }
 0x11e   : > { %v479_v35 = vadd.f32 %v463_v33, %v359_v27  ;;  %v487_v36 = vadd.f32 %v471_v34, %v407_v28 }
 0x120   : > { %495 = vst [vmem:[%s833_s20 + $0x38] sm:$0xff] %v479_v35  ;;  %503 = vst [vmem:[%s833_s20 + $0x78] sm:$0xff] %v487_v36 }
 0x121 PF: > { %s14_s15 = sadd.s32 1, %s636_s15  }
 0x122   : > { %p11_p4 = scmp.ge.s32.totalorder %s14_s15, 6  }
 0x124   :  { %13 = sbr.rel (!%p11_p4) target bundleno = 1 (0x1), region = 66 }

</bundles_post_ra>
